<compile_context>
chip_gen: v5e
topology: v5e:2x2
jax: 0.10.0
libtpu: 0.0.40
codegen_flags: <defaults>
</compile_context>

<pallas_src>
import functools

import jax
import jax.numpy as jnp
from jax.experimental import pallas as pl
from jax.experimental.pallas import tpu as pltpu


# ---------------------------------------------------------------------------
# Kernel: one time-chunk of the 2-layer LSTM recurrence.
# ---------------------------------------------------------------------------
def _lstm_chunk_kernel(maxlen_ref,              # SMEM (1,) i32   scalar prefetch: max valid length
                       xp_ref,                  # (Tt, Bg, 4*Hp)  layer-0 x-proj + bias (f32 or bf16)
                       len_ref,                 # (Bg, 1) i32     per-row sequence lengths
                       whh0_ref,                # (Hp, 4*Hp) f32  layer-0 recurrent weights
                       wih1_ref,                # (Hp, 4*Hp) f32  layer-1 input weights
                       whh1_ref,                # (Hp, 4*Hp) f32  layer-1 recurrent weights
                       b1_ref,                  # (1, 4*Hp) f32   layer-1 bias
                       out_ref,                 # (Bg, Hp) f32    top-layer h at t = len-1
                       h1, c1, h2, c2):         # VMEM scratch (Bg, Hp) f32, carried across chunks
    Tt = xp_ref.shape[0]
    Bg, Hp = out_ref.shape
    chunk = pl.program_id(1)

    # Zero initial states / output at the first chunk of each batch group
    # (matches h0 = c0 = 0 in the PyTorch module).
    @pl.when(chunk == 0)
    def _():
        h1[...] = jnp.zeros_like(h1)
        c1[...] = jnp.zeros_like(c1)
        h2[...] = jnp.zeros_like(h2)
        c2[...] = jnp.zeros_like(c2)
        out_ref[...] = jnp.zeros_like(out_ref)

    # Hoist the layer-1 bias broadcast out of the serial loop (JAX does not
    # CSE broadcast_in_dim across loop iterations).
    b1b = jnp.broadcast_to(b1_ref[...], (Bg, 4 * Hp))

    t0 = chunk * Tt                                   # first global timestep of this chunk
    n_steps = jnp.clip(maxlen_ref[0] - t0, 0, Tt)     # dynamic trip count: skip padded tail

    @pl.loop(0, n_steps)
    def _step(t):
        # ---- layer 0: x-projection precomputed on the host; only h @ W_hh here
        g0 = xp_ref[t].astype(jnp.float32) + jnp.dot(
            h1[...], whh0_ref[...], preferred_element_type=jnp.float32)
        # gate slabs are lane-aligned: gate k owns columns [k*Hp, (k+1)*Hp)
        i0 = jax.nn.sigmoid(g0[:, 0 * Hp:1 * Hp])
        f0 = jax.nn.sigmoid(g0[:, 1 * Hp:2 * Hp])
        gg0 = jnp.tanh(g0[:, 2 * Hp:3 * Hp])
        o0 = jax.nn.sigmoid(g0[:, 3 * Hp:4 * Hp])
        c1_new = f0 * c1[...] + i0 * gg0
        h1_new = o0 * jnp.tanh(c1_new)
        c1[...] = c1_new
        h1[...] = h1_new

        # ---- layer 1: two dots into one f32 accumulation (no concatenate copy)
        g1 = (jnp.dot(h1_new, wih1_ref[...], preferred_element_type=jnp.float32)
              + jnp.dot(h2[...], whh1_ref[...], preferred_element_type=jnp.float32)
              + b1b)
        i1 = jax.nn.sigmoid(g1[:, 0 * Hp:1 * Hp])
        f1 = jax.nn.sigmoid(g1[:, 1 * Hp:2 * Hp])
        gg1 = jnp.tanh(g1[:, 2 * Hp:3 * Hp])
        o1 = jax.nn.sigmoid(g1[:, 3 * Hp:4 * Hp])
        c2_new = f1 * c2[...] + i1 * gg1
        h2_new = o1 * jnp.tanh(c2_new)
        c2[...] = c2_new
        h2[...] = h2_new

        # select the top-layer output at the last valid timestep of each row
        mask = len_ref[...] == (t0 + t + 1)            # (Bg, 1) bool
        out_ref[...] = jnp.where(mask, h2_new, out_ref[...])


# ---------------------------------------------------------------------------
# Host-side weight layout helpers (gate-aligned padding: gate k -> its own
# Hp-wide, 128-lane-aligned column slab; recurrent rows zero-padded H -> Hp).
# ---------------------------------------------------------------------------
def _gate_pad_cols(w_t, H, Hp):
    """w_t: (in_dim, 4H) -> (in_dim, 4*Hp) with gate k in cols [k*Hp, k*Hp+H)."""
    in_dim = w_t.shape[0]
    out = jnp.zeros((in_dim, 4 * Hp), w_t.dtype)
    for k in range(4):
        out = out.at[:, k * Hp:k * Hp + H].set(w_t[:, k * H:(k + 1) * H])
    return out


def _gate_pad_bias(b, H, Hp):
    out = jnp.zeros((4 * Hp,), b.dtype)
    for k in range(4):
        out = out.at[k * Hp:k * Hp + H].set(b[k * H:(k + 1) * H])
    return out


def _pad_rows(w, Hp):
    """(H, G) -> (Hp, G) with zero rows H..Hp."""
    H = w.shape[0]
    if H == Hp:
        return w
    return jnp.zeros((Hp, w.shape[1]), w.dtype).at[:H, :].set(w)


# ---------------------------------------------------------------------------
# Wrapper
# ---------------------------------------------------------------------------
@functools.partial(jax.jit,
                   static_argnames=("hidden_size", "xp_dtype", "time_chunk"))
def lstm_forward(state, action, length, params, *, hidden_size,
                 xp_dtype=jnp.float32, time_chunk=None):
    """state (B,T,S) f32, action (B,T,A) f32, length (B,) int -> (B,H) f32.

    xp_dtype=jnp.bfloat16 halves the HBM/VMEM footprint of the streamed,
    pre-projected input on every TPU generation (it is cast back to f32
    before use, so no bf16 matmuls are ever issued).
    """
    B, T, _ = state.shape
    H = hidden_size
    Hp = ((H + 127) // 128) * 128                     # lane-aligned gate slab width
    # NOTE: for production H >= 128 this padding is free; for tiny H it trades
    # some MXU/EUP lanes for simple, lane-aligned gate slicing.

    x = jnp.concatenate([state, action], axis=2).astype(jnp.float32)   # (B, T, D)

    # ---- weight prep (gate-aligned padded layout, all f32) -------------------
    f32 = jnp.float32
    wih0_p = _gate_pad_cols(params["w_ih_l0"].T.astype(f32), H, Hp)               # (D, 4Hp)
    b0_p = _gate_pad_bias((params["b_ih_l0"] + params["b_hh_l0"]).astype(f32), H, Hp)
    whh0_p = _pad_rows(_gate_pad_cols(params["w_hh_l0"].T.astype(f32), H, Hp), Hp)  # (Hp, 4Hp)
    wih1_p = _pad_rows(_gate_pad_cols(params["w_ih_l1"].T.astype(f32), H, Hp), Hp)  # (Hp, 4Hp)
    whh1_p = _pad_rows(_gate_pad_cols(params["w_hh_l1"].T.astype(f32), H, Hp), Hp)  # (Hp, 4Hp)
    b1_p = _gate_pad_bias((params["b_ih_l1"] + params["b_hh_l1"]).astype(f32), H, Hp)
    b1_p = b1_p.reshape(1, 4 * Hp)

    # ---- layer-0 input projection hoisted out of the recurrence --------------
    # One (T*B, D) @ (D, 4Hp) f32 matmul instead of T tiny matmuls on the
    # serial chain.  All dots are f32 x f32 (no bf16-dot support required).
    xp = jnp.einsum("btd,dg->tbg", x, wih0_p,
                    precision=jax.lax.Precision.HIGHEST) + b0_p
    xp = xp.astype(xp_dtype)                           # (T, B, 4Hp), time-major

    # ---- scalars / lengths ----------------------------------------------------
    # TODO(synk): rows with length == 0 or length > T silently return zeros;
    # PyTorch's pack_padded_sequence would raise.
    max_len = jnp.minimum(jnp.max(length.astype(jnp.int32)),
                          jnp.int32(T)).reshape(1).astype(jnp.int32)
    len2d = length.astype(jnp.int32).reshape(B, 1)

    # ---- grid geometry --------------------------------------------------------
    # v7x has 2 TensorCores: a leading "parallel" batch-group axis lets megacore
    # run half the batch per core.  Only enabled when each half stays
    # sublane-aligned (multiple of 8); size-1 axis is a no-op on 1-TC chips.
    n_bg = 2 if (B % 2 == 0 and (B // 2) % 8 == 0) else 1
    Bg = B // n_bg

    if time_chunk is None:
        # Keep each xp chunk buffer <= ~2 MiB so double-buffering stays far
        # inside the v7x 64 MiB/TC VMEM regardless of T.
        per_step = Bg * 4 * Hp * jnp.dtype(xp_dtype).itemsize
        time_chunk = max(1, min(T, (2 * 1024 * 1024) // per_step))
    Tt = int(time_chunk)
    n_chunks = pl.cdiv(T, Tt)

    out_pad = pl.pallas_call(
        _lstm_chunk_kernel,
        out_shape=jax.ShapeDtypeStruct((B, Hp), jnp.float32),
        grid_spec=pltpu.PrefetchScalarGridSpec(
            num_scalar_prefetch=1,                     # max_len -> SMEM
            grid=(n_bg, n_chunks),                     # (batch groups, time chunks)
            in_specs=[
                pl.BlockSpec((Tt, Bg, 4 * Hp), lambda b, c, m: (c, b, 0)),  # xp chunk (streamed)
                pl.BlockSpec((Bg, 1), lambda b, c, m: (b, 0)),              # lengths
                pl.BlockSpec((Hp, 4 * Hp), lambda b, c, m: (0, 0)),         # W_hh layer 0
                pl.BlockSpec((Hp, 4 * Hp), lambda b, c, m: (0, 0)),         # W_ih layer 1
                pl.BlockSpec((Hp, 4 * Hp), lambda b, c, m: (0, 0)),         # W_hh layer 1
                pl.BlockSpec((1, 4 * Hp), lambda b, c, m: (0, 0)),          # bias layer 1
            ],
            out_specs=pl.BlockSpec((Bg, Hp), lambda b, c, m: (b, 0)),
            scratch_shapes=[pltpu.VMEM((Bg, Hp), jnp.float32)] * 4,         # h1, c1, h2, c2
        ),
        compiler_params=pltpu.CompilerParams(
            dimension_semantics=("parallel", "arbitrary"),
            # Time-chunking bounds the working set independent of T; 32 MiB
            # fits every generation (v7x: 64 MiB/TC, v5e/v6e: 128 MiB).
            vmem_limit_bytes=32 * 1024 * 1024,
        ),
    )(max_len, xp, len2d, whh0_p, wih1_p, whh1_p, b1_p)

    return out_pad[:, :H]


# ---------------------------------------------------------------------------
# Deterministic init matching nn.LSTM param shapes (uniform(-1/sqrt(H), 1/sqrt(H)))
# ---------------------------------------------------------------------------
def init_params(key, state_dim, action_dim, hidden_size):
    D = state_dim + action_dim
    H = hidden_size
    k = 1.0 / jnp.sqrt(jnp.float32(H))
    shapes = {
        "w_ih_l0": (4 * H, D), "w_hh_l0": (4 * H, H),
        "b_ih_l0": (4 * H,), "b_hh_l0": (4 * H,),
        "w_ih_l1": (4 * H, H), "w_hh_l1": (4 * H, H),
        "b_ih_l1": (4 * H,), "b_hh_l1": (4 * H,),
    }
    params = {}
    for name, shape in shapes.items():
        key, sub = jax.random.split(key)
        params[name] = jax.random.uniform(sub, shape, jnp.float32, -k, k)
    return params


# ---------------------------------------------------------------------------
# Pure-JAX reference (lax.scan) with the same semantics, for validation.
# ---------------------------------------------------------------------------
def _lstm_reference(state, action, length, params, hidden_size):
    H = hidden_size
    P = jax.lax.Precision.HIGHEST
    x = jnp.concatenate([state, action], axis=2)  # (B, T, D)
    B, T, _ = x.shape

    def layer(xs, wih, whh, b):
        def step(carry, x_t):
            h, c = carry
            g = (jnp.dot(x_t, wih.T, precision=P)
                 + jnp.dot(h, whh.T, precision=P) + b)
            i = jax.nn.sigmoid(g[:, :H])
            f = jax.nn.sigmoid(g[:, H:2 * H])
            gg = jnp.tanh(g[:, 2 * H:3 * H])
            o = jax.nn.sigmoid(g[:, 3 * H:4 * H])
            c = f * c + i * gg
            h = o * jnp.tanh(c)
            return (h, c), h
        h0 = jnp.zeros((B, H), jnp.float32)
        _, ys = jax.lax.scan(step, (h0, h0), jnp.transpose(xs, (1, 0, 2)))
        return jnp.transpose(ys, (1, 0, 2))  # (B, T, H)

    z1 = layer(x, params["w_ih_l0"], params["w_hh_l0"],
               params["b_ih_l0"] + params["b_hh_l0"])
    z2 = layer(z1, params["w_ih_l1"], params["w_hh_l1"],
               params["b_ih_l1"] + params["b_hh_l1"])
    idx = (length - 1).astype(jnp.int32)
    return z2[jnp.arange(B), idx]  # (B, H)


if __name__ == "__main__":
    B, T = 2, 8
    state_dim, action_dim, hidden_size = 4, 4, 32

    key = jax.random.PRNGKey(0)
    k_s, k_a, k_p = jax.random.split(key, 3)
    state = jax.random.normal(k_s, (B, T, state_dim), jnp.float32)
    action = jax.random.normal(k_a, (B, T, action_dim), jnp.float32)
    length = jnp.array([8, 3], dtype=jnp.int32)   # per-sequence valid lengths

    params = init_params(k_p, state_dim, action_dim, hidden_size)
    ref = _lstm_reference(state, action, length, params, hidden_size)

    # f32 path, forced multi-chunk grid (Tt=4 -> 2 time chunks) to exercise the
    # carried h/c scratch and the per-chunk masked writeback.
    out = lstm_forward(state, action, length, params,
                       hidden_size=hidden_size, time_chunk=4)
    out = jax.block_until_ready(out)
    assert out.shape == (B, hidden_size)
    err = float(jnp.max(jnp.abs(out - ref)))
    assert err < 2e-2, f"f32 path mismatch vs JAX reference: max abs err {err}"

    # bf16-storage path for the streamed xp (no bf16 dots anywhere), auto chunking.
    out_bf = lstm_forward(state, action, length, params,
                          hidden_size=hidden_size, xp_dtype=jnp.bfloat16)
    out_bf = jax.block_until_ready(out_bf)
    assert out_bf.shape == (B, hidden_size)
    err_bf = float(jnp.max(jnp.abs(out_bf - ref)))
    assert err_bf < 8e-2, f"bf16-xp path mismatch vs JAX reference: max abs err {err_bf}"

    print("KERNEL_OK")
</pallas_src>

<mosaic_0001>
module attributes {stable_mosaic.version = 11 : i64} {
  func.func @_lstm_chunk_kernel(%arg0: i32, %arg1: i32, %arg2: memref<1xi32, #tpu.memory_space<smem>>, %arg3: memref<4x2x512xf32, #tpu.memory_space<vmem>>, %arg4: memref<2x1xi32, #tpu.memory_space<vmem>>, %arg5: memref<128x512xf32, #tpu.memory_space<vmem>>, %arg6: memref<128x512xf32, #tpu.memory_space<vmem>>, %arg7: memref<128x512xf32, #tpu.memory_space<vmem>>, %arg8: memref<1x512xf32, #tpu.memory_space<vmem>>, %arg9: memref<2x128xf32, #tpu.memory_space<vmem>>, %arg10: memref<2x128xf32, #tpu.memory_space<vmem>>, %arg11: memref<2x128xf32, #tpu.memory_space<vmem>>, %arg12: memref<2x128xf32, #tpu.memory_space<vmem>>, %arg13: memref<2x128xf32, #tpu.memory_space<vmem>>) attributes {dimension_semantics = [#tpu.dimension_semantics<parallel>, #tpu.dimension_semantics<arbitrary>], iteration_bounds = array<i64: 1, 2>, scalar_prefetch = 1 : i64, scratch_operands = 4 : i64, tpu.core_type = #tpu.core_type<tc>, window_params = [{transform_indices = @transform_0, window_bounds = array<i64: 4, 2, 512>}, {transform_indices = @transform_1, window_bounds = array<i64: 2, 1>}, {pipeline_mode = #tpu.pipeline_mode<synchronous>, transform_indices = @transform_2, window_bounds = array<i64: 128, 512>}, {pipeline_mode = #tpu.pipeline_mode<synchronous>, transform_indices = @transform_3, window_bounds = array<i64: 128, 512>}, {pipeline_mode = #tpu.pipeline_mode<synchronous>, transform_indices = @transform_4, window_bounds = array<i64: 128, 512>}, {pipeline_mode = #tpu.pipeline_mode<synchronous>, transform_indices = @transform_5, window_bounds = array<i64: 1, 512>}, {transform_indices = @transform_6, window_bounds = array<i64: 2, 128>}]} {
    %c0_i32 = arith.constant 0 : i32
    %0 = arith.cmpi eq, %arg1, %c0_i32 : i32
    %1 = arith.extui %0 : i1 to i32
    %c0_i32_0 = arith.constant 0 : i32
    %2 = arith.cmpi ne, %1, %c0_i32_0 : i32
    scf.if %2 {
      %cst = arith.constant 0.000000e+00 : f32
      %17 = vector.broadcast %cst : f32 to vector<2x128xf32>
      %c0_12 = arith.constant 0 : index
      %c0_13 = arith.constant 0 : index
      %18 = vector.load %arg10[%c0_12, %c0_13] : memref<2x128xf32, #tpu.memory_space<vmem>>, vector<2x128xf32>
      tpu.vector_store %arg10[%c0_12, %c0_13], %17 {strides = array<i32>} : memref<2x128xf32, #tpu.memory_space<vmem>>, vector<2x128xf32>,
      %cst_14 = arith.constant 0.000000e+00 : f32
      %19 = vector.broadcast %cst_14 : f32 to vector<2x128xf32>
      %c0_15 = arith.constant 0 : index
      %c0_16 = arith.constant 0 : index
      %20 = vector.load %arg11[%c0_15, %c0_16] : memref<2x128xf32, #tpu.memory_space<vmem>>, vector<2x128xf32>
      tpu.vector_store %arg11[%c0_15, %c0_16], %19 {strides = array<i32>} : memref<2x128xf32, #tpu.memory_space<vmem>>, vector<2x128xf32>,
      %cst_17 = arith.constant 0.000000e+00 : f32
      %21 = vector.broadcast %cst_17 : f32 to vector<2x128xf32>
      %c0_18 = arith.constant 0 : index
      %c0_19 = arith.constant 0 : index
      %22 = vector.load %arg12[%c0_18, %c0_19] : memref<2x128xf32, #tpu.memory_space<vmem>>, vector<2x128xf32>
      tpu.vector_store %arg12[%c0_18, %c0_19], %21 {strides = array<i32>} : memref<2x128xf32, #tpu.memory_space<vmem>>, vector<2x128xf32>,
      %cst_20 = arith.constant 0.000000e+00 : f32
      %23 = vector.broadcast %cst_20 : f32 to vector<2x128xf32>
      %c0_21 = arith.constant 0 : index
      %c0_22 = arith.constant 0 : index
      %24 = vector.load %arg13[%c0_21, %c0_22] : memref<2x128xf32, #tpu.memory_space<vmem>>, vector<2x128xf32>
      tpu.vector_store %arg13[%c0_21, %c0_22], %23 {strides = array<i32>} : memref<2x128xf32, #tpu.memory_space<vmem>>, vector<2x128xf32>,
      %cst_23 = arith.constant 0.000000e+00 : f32
      %25 = vector.broadcast %cst_23 : f32 to vector<2x128xf32>
      %c0_24 = arith.constant 0 : index
      %c0_25 = arith.constant 0 : index
      %26 = vector.load %arg9[%c0_24, %c0_25] : memref<2x128xf32, #tpu.memory_space<vmem>>, vector<2x128xf32>
      tpu.vector_store %arg9[%c0_24, %c0_25], %25 {strides = array<i32>} : memref<2x128xf32, #tpu.memory_space<vmem>>, vector<2x128xf32>,
    } else {
    }
    %c0 = arith.constant 0 : index
    %c0_1 = arith.constant 0 : index
    %3 = vector.load %arg8[%c0, %c0_1] : memref<1x512xf32, #tpu.memory_space<vmem>>, vector<1x512xf32>
    %4 = vector.shape_cast %3 : vector<1x512xf32> to vector<1x512xf32>
    %5 = vector.broadcast %4 : vector<1x512xf32> to vector<2x512xf32>
    %c4_i32 = arith.constant 4 : i32
    %6 = arith.muli %arg1, %c4_i32 : i32
    %c0_2 = arith.constant 0 : index
    %7 = memref.load %arg2[%c0_2] : memref<1xi32, #tpu.memory_space<smem>>
    %8 = arith.subi %7, %6 : i32
    %c0_i32_3 = arith.constant 0 : i32
    %c4_i32_4 = arith.constant 4 : i32
    %9 = arith.maxsi %c0_i32_3, %8 : i32
    %10 = arith.minsi %c4_i32_4, %9 : i32
    %c0_i32_5 = arith.constant 0 : i32
    %11 = arith.subi %10, %c0_i32_5 : i32
    %c1_i32 = arith.constant 1 : i32
    %c1_i32_6 = arith.constant 1 : i32
    %12 = arith.subi %c1_i32, %c1_i32_6 : i32
    %13 = arith.addi %11, %12 : i32
    %c1_i32_7 = arith.constant 1 : i32
    %14 = arith.divsi %13, %c1_i32_7 : i32
    %c1_i32_8 = arith.constant 1 : i32
    %c0_i32_9 = arith.constant 0 : i32
    %c0_i32_10 = arith.constant 0 : i32
    %15 = arith.subi %14, %c0_i32_10 : i32
    %16 = arith.addi %c0_i32_10, %15 : i32
    %c1_i32_11 = arith.constant 1 : i32
    scf.for %arg14 = %c0_i32_10 to %16 step %c1_i32_11  : i32 {
      %17 = arith.muli %arg14, %c1_i32_8 : i32
      %18 = arith.addi %c0_i32_9, %17 : i32
      %19 = arith.index_cast %18 : i32 to index
      %c0_12 = arith.constant 0 : index
      %c0_13 = arith.constant 0 : index
      %20 = vector.load %arg3[%19, %c0_12, %c0_13] : memref<4x2x512xf32, #tpu.memory_space<vmem>>, vector<1x2x512xf32>
      %21 = vector.shape_cast %20 : vector<1x2x512xf32> to vector<2x512xf32>
      %c0_14 = arith.constant 0 : index
      %c0_15 = arith.constant 0 : index
      %22 = vector.load %arg10[%c0_14, %c0_15] : memref<2x128xf32, #tpu.memory_space<vmem>>, vector<2x128xf32>
      %c0_16 = arith.constant 0 : index
      %c0_17 = arith.constant 0 : index
      %23 = vector.load %arg5[%c0_16, %c0_17] : memref<128x512xf32, #tpu.memory_space<vmem>>, vector<128x512xf32>
      %cst = arith.constant dense<0.000000e+00> : vector<2x512xf32>
      %24 = tpu.matmul %22, %23, %cst {dimension_numbers = #tpu.dot_dimension_numbers<[1], [0], [0], [1], [0, 0, 1, 1], [], []>} : vector<2x128xf32>, vector<128x512xf32>, vector<2x512xf32> -> vector<2x512xf32>
      %25 = arith.addf %21, %24 : vector<2x512xf32>
      %26 = vector.extract_strided_slice %25 {offsets = [0, 0], sizes = [2, 128], strides = [1, 1]} : vector<2x512xf32> to vector<2x128xf32>
      %27 = arith.negf %26 : vector<2x128xf32>
      %28 = math.exp %27 : vector<2x128xf32>
      %cst_18 = arith.constant 1.000000e+00 : f32
      %29 = vector.broadcast %cst_18 : f32 to vector<2x128xf32>
      %30 = arith.addf %29, %28 : vector<2x128xf32>
      %31 = arith.divf %29, %30 : vector<2x128xf32>
      %32 = vector.extract_strided_slice %25 {offsets = [0, 128], sizes = [2, 128], strides = [1, 1]} : vector<2x512xf32> to vector<2x128xf32>
      %33 = arith.negf %32 : vector<2x128xf32>
      %34 = math.exp %33 : vector<2x128xf32>
      %cst_19 = arith.constant 1.000000e+00 : f32
      %35 = vector.broadcast %cst_19 : f32 to vector<2x128xf32>
      %36 = arith.addf %35, %34 : vector<2x128xf32>
      %37 = arith.divf %35, %36 : vector<2x128xf32>
      %38 = vector.extract_strided_slice %25 {offsets = [0, 256], sizes = [2, 128], strides = [1, 1]} : vector<2x512xf32> to vector<2x128xf32>
      %39 = math.tanh %38 : vector<2x128xf32>
      %40 = vector.extract_strided_slice %25 {offsets = [0, 384], sizes = [2, 128], strides = [1, 1]} : vector<2x512xf32> to vector<2x128xf32>
      %41 = arith.negf %40 : vector<2x128xf32>
      %42 = math.exp %41 : vector<2x128xf32>
      %cst_20 = arith.constant 1.000000e+00 : f32
      %43 = vector.broadcast %cst_20 : f32 to vector<2x128xf32>
      %44 = arith.addf %43, %42 : vector<2x128xf32>
      %45 = arith.divf %43, %44 : vector<2x128xf32>
      %c0_21 = arith.constant 0 : index
      %c0_22 = arith.constant 0 : index
      %46 = vector.load %arg11[%c0_21, %c0_22] : memref<2x128xf32, #tpu.memory_space<vmem>>, vector<2x128xf32>
      %47 = arith.mulf %37, %46 : vector<2x128xf32>
      %48 = arith.mulf %31, %39 : vector<2x128xf32>
      %49 = arith.addf %47, %48 : vector<2x128xf32>
      %50 = math.tanh %49 : vector<2x128xf32>
      %51 = arith.mulf %45, %50 : vector<2x128xf32>
      %c0_23 = arith.constant 0 : index
      %c0_24 = arith.constant 0 : index
      %52 = vector.load %arg11[%c0_23, %c0_24] : memref<2x128xf32, #tpu.memory_space<vmem>>, vector<2x128xf32>
      tpu.vector_store %arg11[%c0_23, %c0_24], %49 {strides = array<i32>} : memref<2x128xf32, #tpu.memory_space<vmem>>, vector<2x128xf32>,
      %c0_25 = arith.constant 0 : index
      %c0_26 = arith.constant 0 : index
      %53 = vector.load %arg10[%c0_25, %c0_26] : memref<2x128xf32, #tpu.memory_space<vmem>>, vector<2x128xf32>
      tpu.vector_store %arg10[%c0_25, %c0_26], %51 {strides = array<i32>} : memref<2x128xf32, #tpu.memory_space<vmem>>, vector<2x128xf32>,
      %c0_27 = arith.constant 0 : index
      %c0_28 = arith.constant 0 : index
      %54 = vector.load %arg6[%c0_27, %c0_28] : memref<128x512xf32, #tpu.memory_space<vmem>>, vector<128x512xf32>
      %cst_29 = arith.constant dense<0.000000e+00> : vector<2x512xf32>
      %55 = tpu.matmul %51, %54, %cst_29 {dimension_numbers = #tpu.dot_dimension_numbers<[1], [0], [0], [1], [0, 0, 1, 1], [], []>} : vector<2x128xf32>, vector<128x512xf32>, vector<2x512xf32> -> vector<2x512xf32>
      %c0_30 = arith.constant 0 : index
      %c0_31 = arith.constant 0 : index
      %56 = vector.load %arg12[%c0_30, %c0_31] : memref<2x128xf32, #tpu.memory_space<vmem>>, vector<2x128xf32>
      %c0_32 = arith.constant 0 : index
      %c0_33 = arith.constant 0 : index
      %57 = vector.load %arg7[%c0_32, %c0_33] : memref<128x512xf32, #tpu.memory_space<vmem>>, vector<128x512xf32>
      %cst_34 = arith.constant dense<0.000000e+00> : vector<2x512xf32>
      %58 = tpu.matmul %56, %57, %cst_34 {dimension_numbers = #tpu.dot_dimension_numbers<[1], [0], [0], [1], [0, 0, 1, 1], [], []>} : vector<2x128xf32>, vector<128x512xf32>, vector<2x512xf32> -> vector<2x512xf32>
      %59 = arith.addf %55, %58 : vector<2x512xf32>
      %60 = arith.addf %59, %5 : vector<2x512xf32>
      %61 = vector.extract_strided_slice %60 {offsets = [0, 0], sizes = [2, 128], strides = [1, 1]} : vector<2x512xf32> to vector<2x128xf32>
      %62 = arith.negf %61 : vector<2x128xf32>
      %63 = math.exp %62 : vector<2x128xf32>
      %cst_35 = arith.constant 1.000000e+00 : f32
      %64 = vector.broadcast %cst_35 : f32 to vector<2x128xf32>
      %65 = arith.addf %64, %63 : vector<2x128xf32>
      %66 = arith.divf %64, %65 : vector<2x128xf32>
      %67 = vector.extract_strided_slice %60 {offsets = [0, 128], sizes = [2, 128], strides = [1, 1]} : vector<2x512xf32> to vector<2x128xf32>
      %68 = arith.negf %67 : vector<2x128xf32>
      %69 = math.exp %68 : vector<2x128xf32>
      %cst_36 = arith.constant 1.000000e+00 : f32
      %70 = vector.broadcast %cst_36 : f32 to vector<2x128xf32>
      %71 = arith.addf %70, %69 : vector<2x128xf32>
      %72 = arith.divf %70, %71 : vector<2x128xf32>
      %73 = vector.extract_strided_slice %60 {offsets = [0, 256], sizes = [2, 128], strides = [1, 1]} : vector<2x512xf32> to vector<2x128xf32>
      %74 = math.tanh %73 : vector<2x128xf32>
      %75 = vector.extract_strided_slice %60 {offsets = [0, 384], sizes = [2, 128], strides = [1, 1]} : vector<2x512xf32> to vector<2x128xf32>
      %76 = arith.negf %75 : vector<2x128xf32>
      %77 = math.exp %76 : vector<2x128xf32>
      %cst_37 = arith.constant 1.000000e+00 : f32
      %78 = vector.broadcast %cst_37 : f32 to vector<2x128xf32>
      %79 = arith.addf %78, %77 : vector<2x128xf32>
      %80 = arith.divf %78, %79 : vector<2x128xf32>
      %c0_38 = arith.constant 0 : index
      %c0_39 = arith.constant 0 : index
      %81 = vector.load %arg13[%c0_38, %c0_39] : memref<2x128xf32, #tpu.memory_space<vmem>>, vector<2x128xf32>
      %82 = arith.mulf %72, %81 : vector<2x128xf32>
      %83 = arith.mulf %66, %74 : vector<2x128xf32>
      %84 = arith.addf %82, %83 : vector<2x128xf32>
      %85 = math.tanh %84 : vector<2x128xf32>
      %86 = arith.mulf %80, %85 : vector<2x128xf32>
      %c0_40 = arith.constant 0 : index
      %c0_41 = arith.constant 0 : index
      %87 = vector.load %arg13[%c0_40, %c0_41] : memref<2x128xf32, #tpu.memory_space<vmem>>, vector<2x128xf32>
      tpu.vector_store %arg13[%c0_40, %c0_41], %84 {strides = array<i32>} : memref<2x128xf32, #tpu.memory_space<vmem>>, vector<2x128xf32>,
      %c0_42 = arith.constant 0 : index
      %c0_43 = arith.constant 0 : index
      %88 = vector.load %arg12[%c0_42, %c0_43] : memref<2x128xf32, #tpu.memory_space<vmem>>, vector<2x128xf32>
      tpu.vector_store %arg12[%c0_42, %c0_43], %86 {strides = array<i32>} : memref<2x128xf32, #tpu.memory_space<vmem>>, vector<2x128xf32>,
      %c0_44 = arith.constant 0 : index
      %c0_45 = arith.constant 0 : index
      %89 = vector.load %arg4[%c0_44, %c0_45] : memref<2x1xi32, #tpu.memory_space<vmem>>, vector<2x1xi32>
      %90 = arith.addi %6, %18 : i32
      %c1_i32_46 = arith.constant 1 : i32
      %91 = arith.addi %90, %c1_i32_46 : i32
      %92 = vector.broadcast %91 : i32 to vector<2x1xi32>
      %93 = arith.cmpi eq, %89, %92 : vector<2x1xi32>
      %c0_47 = arith.constant 0 : index
      %c0_48 = arith.constant 0 : index
      %94 = vector.load %arg9[%c0_47, %c0_48] : memref<2x128xf32, #tpu.memory_space<vmem>>, vector<2x128xf32>
      %95 = vector.shape_cast %93 : vector<2x1xi1> to vector<2x1xi1>
      %96 = vector.broadcast %95 : vector<2x1xi1> to vector<2x128xi1>
      %97 = arith.select %96, %86, %94 : vector<2x128xi1>, vector<2x128xf32>
      %c0_49 = arith.constant 0 : index
      %c0_50 = arith.constant 0 : index
      %98 = vector.load %arg9[%c0_49, %c0_50] : memref<2x128xf32, #tpu.memory_space<vmem>>, vector<2x128xf32>
      tpu.vector_store %arg9[%c0_49, %c0_50], %97 {strides = array<i32>} : memref<2x128xf32, #tpu.memory_space<vmem>>, vector<2x128xf32>,
    }
    return
  }
  func.func @transform_0(%arg0: i32, %arg1: i32, %arg2: memref<1xi32, #tpu.memory_space<smem>>) -> (i32, i32, i32) {
    %c0_i32 = arith.constant 0 : i32
    %c0_i32_0 = arith.constant 0 : i32
    return %arg1, %arg0, %c0_i32 : i32, i32, i32
  }
  func.func @transform_1(%arg0: i32, %arg1: i32, %arg2: memref<1xi32, #tpu.memory_space<smem>>) -> (i32, i32) {
    %c0_i32 = arith.constant 0 : i32
    %c0_i32_0 = arith.constant 0 : i32
    return %arg0, %c0_i32 : i32, i32
  }
  func.func @transform_2(%arg0: i32, %arg1: i32, %arg2: memref<1xi32, #tpu.memory_space<smem>>) -> (i32, i32) {
    %c0_i32 = arith.constant 0 : i32
    %c0_i32_0 = arith.constant 0 : i32
    %c0_i32_1 = arith.constant 0 : i32
    return %c0_i32, %c0_i32_0 : i32, i32
  }
  func.func @transform_3(%arg0: i32, %arg1: i32, %arg2: memref<1xi32, #tpu.memory_space<smem>>) -> (i32, i32) {
    %c0_i32 = arith.constant 0 : i32
    %c0_i32_0 = arith.constant 0 : i32
    %c0_i32_1 = arith.constant 0 : i32
    return %c0_i32, %c0_i32_0 : i32, i32
  }
  func.func @transform_4(%arg0: i32, %arg1: i32, %arg2: memref<1xi32, #tpu.memory_space<smem>>) -> (i32, i32) {
    %c0_i32 = arith.constant 0 : i32
    %c0_i32_0 = arith.constant 0 : i32
    %c0_i32_1 = arith.constant 0 : i32
    return %c0_i32, %c0_i32_0 : i32, i32
  }
  func.func @transform_5(%arg0: i32, %arg1: i32, %arg2: memref<1xi32, #tpu.memory_space<smem>>) -> (i32, i32) {
    %c0_i32 = arith.constant 0 : i32
    %c0_i32_0 = arith.constant 0 : i32
    %c0_i32_1 = arith.constant 0 : i32
    return %c0_i32, %c0_i32_0 : i32, i32
  }
  func.func @transform_6(%arg0: i32, %arg1: i32, %arg2: memref<1xi32, #tpu.memory_space<smem>>) -> (i32, i32) {
    %c0_i32 = arith.constant 0 : i32
    %c0_i32_0 = arith.constant 0 : i32
    return %arg0, %c0_i32 : i32, i32
  }
}

</mosaic_0001>

<bundles_post_ra>
// kernel: lstm_forward.1
= control target key start
LH: loop header
LB: loop body
LE: loop exit
PB: predicated region body
PF: predicated region fallthrough
CT: control target
= control target key end

     0   :  { %s1919_s0 = inlined_call_operand.<no memory space> [shape: s32[1], index: 0, kind: input, shape index: {}]   ;;  %s1920_s1 = inlined_call_operand.vmem [shape: f32[8,2,512], index: 1, kind: input, shape index: {}]   ;;  %s1921_s2 = inlined_call_operand.vmem [shape: s32[2,1], index: 2, kind: input, shape index: {}]   ;;  %s1922_s3 = inlined_call_operand.vmem [shape: f32[128,512], index: 3, kind: input, shape index: {}]   ;;  %s1923_s4 = inlined_call_operand.vmem [shape: f32[128,512], index: 4, kind: input, shape index: {}]   ;;  %s1924_s5 = inlined_call_operand.vmem [shape: f32[128,512], index: 5, kind: input, shape index: {}]   ;;  %s1925_s6 = inlined_call_operand.vmem [shape: f32[1,512], index: 6, kind: input, shape index: {}]   ;;  %s1926_s7 = inlined_call_operand.hbm [shape: f32[2,128], index: 7, kind: output, shape index: {}]  }
   0x1   :  { %12 = sst [smem:[#allocation7]] %s1919_s0 }
   0x2   :  { %13 = vsyncpa [#allocation9], 0  ;;  %s1242_s26 = smov 0   ;;  %s1244_s27 = smov 0  }
   0x3   :  { %s1246_s28 = smov 0  }
   0x4 LB: > { %s1026_s0 = sadd.s32 4294967295, %s1190_s28   ;;  %s28_s29 = sadd.s32 1, %s1186_s27  ;;  %s1190_s28 = sphi %s1246_s28, %s19_s28   ;;  %s1186_s27 = sphi %s1244_s27, %s1928_s27   ;;  %s1182_s26 = sphi %s1242_s26, %s1927_s26  }
   0x5   : > { %p29_p0 = scmp.ge.s32.totalorder %s28_s29, 2  ;;  %p1030_p1 = scmp.ge.s32.totalorder %s1190_s28, 1 }
   0x6   : > { %p244_p2 = scmp.lt.s32.totalorder %s1190_s28, 3 }
   0x7   : > { %s1930_s29 = smov (%p29_p0, %s28_s29), 0 }
   0x8   : > { %p245_p3 = pnand %p1030_p1, %p244_p2 }
   0x9   : > { %s1261_s30 = sshll.u32 (!%p245_p3), %s1182_s26, 2  ;;  %p1034_p5 = scmp.ne.s32.totalorder (!%p245_p3), %s1182_s26, 0 }
   0xa   : > { %248 = sbr.rel (%p245_p3) target bundleno = 438 (0x1b6), region = 44  ;;  %p279_p4 = scmp.lt.s32.totalorder (!%p245_p3), %s1261_s30, 7 }
   0xf   : > { %s280_s8 = scalar_select %p279_p4, %s1261_s30, 7 }
  0x10   : > { %296 = sbr.rel (%p1034_p5) target bundleno = 27 (0x1b), region = 48 }
  0x11   : > { %s1054_s9 = sshll.u32 %s280_s8, 3 }
  0x12   : > { %s1268_s12 = scalar_lea.vmem %s1920_s1, %s1054_s9 }
  0x15   : > { %v1196_v0 = vmov 0.0  }
  0x16   : > { %297 = vst [vmem:[#allocation2] sm:$0x3] %v1196_v0 }
  0x17   : > { %298 = vst [vmem:[#allocation3] sm:$0x3] %v1196_v0 }
  0x18   : > { %299 = vst [vmem:[#allocation4] sm:$0x3] %v1196_v0 }
  0x19   : > { %300 = vst [vmem:[#allocation5] sm:$0x3] %v1196_v0 }
  0x1a   : > { %301 = vst [vmem:[#allocation8] sm:$0x3] %v1196_v0 }
  0x1b PF: > { %v1273_v1 = vld [vmem:[%s1925_s6] sm:$0xf]  ;;  %s313_s15 = sld [smem:[#allocation7]] }
  0x1c   : > { %v304_v2 = vperm.slane %v1273_v1, 0  ;;  %v305_v3 = vperm.slane %v1273_v1, 1  ;;  %v306_v4 = vperm.slane %v1273_v1, 2  ;;  %v307_v5 = vperm.slane %v1273_v1, 3 }
  0x21   : > { %s314_s16 = ssub.s32 %s313_s15, %s1261_s30 }
  0x22   : > { %p315_p6 = scmp.gt.s32.totalorder %s314_s16, 0  ;;  %p1036_p7 = scmp.lt.s32.totalorder %s314_s16, 4 }
  0x24   : > { %s1932_s16 = smov (!%p315_p6, %s314_s16), 0 }
  0x25   : > { %s1934_s16 = smov (!%p1036_p7, %s1932_s16), 4 }
  0x26   : > { %p1041_p8 = scmp.le.s32.totalorder %s1934_s16, 0 }
  0x27   : > { %s1283_s17 = smov (!%p1041_p8), 0  }
  0x28   : > { %988 = sbr.rel (%p1041_p8) target bundleno = 432 (0x1b0), region = 81 }
  0x2d LB: >> { %v392_v6 = vld [vmem:[%s1922_s3 + $0x1f0] sm:$0xff]  ;;  %v393_v7 = vld [vmem:[%s1922_s3 + $0x1f8] sm:$0xff]  ;;  %v391_v12 = vld [vmem:[%s1922_s3 + $0x1e8] sm:$0xff]  ;;  %s1057_s14 = sshll.u32 %s1194_s17, 3  ;;  %vm481_vm0 = vcmask 1041408   ;;  %vm483_vm1 = vcmask 1045508   ;;  %s922_s10 = sadd.s32 %s1194_s17, %s1261_s30  ;;  %s1194_s17 = sphi %s1283_s17, %s322_s17  }
  0x2e   : >> { %v388_v8 = vld [vmem:[%s1922_s3 + $0x1d0] sm:$0xff]  ;;  %434 = vmatpush.msra.mxu2 %v392_v6  ;;  %454 = vmatpush.msra.mxu3 %v393_v7  ;;  %v389_v9 = vld [vmem:[%s1922_s3 + $0x1d8] sm:$0xff]  ;;  %v390_v13 = vld [vmem:[%s1922_s3 + $0x1e0] sm:$0xff]  ;;  %s327_s8 = scalar_lea.vmem %s1268_s12, %s1057_s14  ;;  %vm485_vm2 = vcmask 1043456   ;;  %s923_s25 = sadd.s32 1, %s922_s10 }
  0x2f   : >> { %v384_v10 = vld [vmem:[%s1922_s3 + $0x1b0] sm:$0xff]  ;;  %v385_v11 = vld [vmem:[%s1922_s3 + $0x1b8] sm:$0xff]  ;;  %v387_v14 = vld [vmem:[%s1922_s3 + $0x1c8] sm:$0xff]  ;;  %414 = vmatpush.msra.mxu1 %v391_v12  ;;  %394 = vmatpush.msra.mxu0 %v390_v13  ;;  %s322_s17 = sadd.s32 1, %s1194_s17  }
  0x30   : >> { %435 = vmatpush.msra.mxu2 %v388_v8  ;;  %455 = vmatpush.msra.mxu3 %v389_v9  ;;  %v380_v15 = vld [vmem:[%s1922_s3 + $0x190] sm:$0xff]  ;;  %v381_v16 = vld [vmem:[%s1922_s3 + $0x198] sm:$0xff]  ;;  %v386_v17 = vld [vmem:[%s1922_s3 + $0x1c0] sm:$0xff]  ;;  %p321_p9 = scmp.ge.s32.totalorder %s322_s17, %s1934_s16 }
  0x31   : >> { %v383_v18 = vld [vmem:[%s1922_s3 + $0x1a8] sm:$0xff]  ;;  %v382_v19 = vld [vmem:[%s1922_s3 + $0x1a0] sm:$0xff]  ;;  %415 = vmatpush.msra.mxu1 %v387_v14  ;;  %v376_v20 = vld [vmem:[%s1922_s3 + $0x170] sm:$0xff]  ;;  %395 = vmatpush.msra.mxu0 %v386_v17 }
  0x32   : >> { %436 = vmatpush.msra.mxu2 %v384_v10  ;;  %456 = vmatpush.msra.mxu3 %v385_v11  ;;  %v377_v21 = vld [vmem:[%s1922_s3 + $0x178] sm:$0xff]  ;;  %v379_v22 = vld [vmem:[%s1922_s3 + $0x188] sm:$0xff]  ;;  %v378_v23 = vld [vmem:[%s1922_s3 + $0x180] sm:$0xff] }
  0x33   : >> { %416 = vmatpush.msra.mxu1 %v383_v18  ;;  %v372_v24 = vld [vmem:[%s1922_s3 + $0x150] sm:$0xff]  ;;  %v373_v25 = vld [vmem:[%s1922_s3 + $0x158] sm:$0xff]  ;;  %396 = vmatpush.msra.mxu0 %v382_v19  ;;  %v375_v26 = vld [vmem:[%s1922_s3 + $0x168] sm:$0xff] }
  0x34   : >> { %437 = vmatpush.msra.mxu2 %v380_v15  ;;  %457 = vmatpush.msra.mxu3 %v381_v16  ;;  %v374_v27 = vld [vmem:[%s1922_s3 + $0x160] sm:$0xff]  ;;  %v368_v28 = vld [vmem:[%s1922_s3 + $0x130] sm:$0xff]  ;;  %v369_v29 = vld [vmem:[%s1922_s3 + $0x138] sm:$0xff] }
  0x35   : >> { %417 = vmatpush.msra.mxu1 %v379_v22  ;;  %397 = vmatpush.msra.mxu0 %v378_v23  ;;  %v371_v30 = vld [vmem:[%s1922_s3 + $0x148] sm:$0xff]  ;;  %v370_v31 = vld [vmem:[%s1922_s3 + $0x140] sm:$0xff]  ;;  %v364_v32 = vld [vmem:[%s1922_s3 + $0x110] sm:$0xff] }
  0x36   : >> { %438 = vmatpush.msra.mxu2 %v376_v20  ;;  %458 = vmatpush.msra.mxu3 %v377_v21  ;;  %v365_v33 = vld [vmem:[%s1922_s3 + $0x118] sm:$0xff]  ;;  %v367_v34 = vld [vmem:[%s1922_s3 + $0x128] sm:$0xff]  ;;  %v366_v35 = vld [vmem:[%s1922_s3 + $0x120] sm:$0xff] }
  0x37   : >> { %418 = vmatpush.msra.mxu1 %v375_v26  ;;  %398 = vmatpush.msra.mxu0 %v374_v27  ;;  %v360_v36 = vld [vmem:[%s1922_s3 + $0xf0] sm:$0xff]  ;;  %v361_v37 = vld [vmem:[%s1922_s3 + $0xf8] sm:$0xff]  ;;  %v363_v38 = vld [vmem:[%s1922_s3 + $0x108] sm:$0xff] }
  0x38   : >> { %439 = vmatpush.msra.mxu2 %v372_v24  ;;  %459 = vmatpush.msra.mxu3 %v373_v25  ;;  %v362_v39 = vld [vmem:[%s1922_s3 + $0x100] sm:$0xff]  ;;  %v356_v40 = vld [vmem:[%s1922_s3 + $0xd0] sm:$0xff]  ;;  %v357_v41 = vld [vmem:[%s1922_s3 + $0xd8] sm:$0xff] }
  0x39   : >> { %419 = vmatpush.msra.mxu1 %v371_v30  ;;  %399 = vmatpush.msra.mxu0 %v370_v31  ;;  %v359_v42 = vld [vmem:[%s1922_s3 + $0xe8] sm:$0xff]  ;;  %v358_v43 = vld [vmem:[%s1922_s3 + $0xe0] sm:$0xff]  ;;  %v352_v44 = vld [vmem:[%s1922_s3 + $0xb0] sm:$0xff] }
  0x3a   : >> { %440 = vmatpush.msra.mxu2 %v368_v28  ;;  %460 = vmatpush.msra.mxu3 %v369_v29  ;;  %v353_v45 = vld [vmem:[%s1922_s3 + $0xb8] sm:$0xff]  ;;  %v355_v46 = vld [vmem:[%s1922_s3 + $0xc8] sm:$0xff]  ;;  %v354_v47 = vld [vmem:[%s1922_s3 + $0xc0] sm:$0xff] }
  0x3b   : >> { %420 = vmatpush.msra.mxu1 %v367_v34  ;;  %400 = vmatpush.msra.mxu0 %v366_v35  ;;  %v348_v48 = vld [vmem:[%s1922_s3 + $0x90] sm:$0xff]  ;;  %v349_v49 = vld [vmem:[%s1922_s3 + $0x98] sm:$0xff]  ;;  %v351_v50 = vld [vmem:[%s1922_s3 + $0xa8] sm:$0xff] }
  0x3c   : >> { %441 = vmatpush.msra.mxu2 %v364_v32  ;;  %461 = vmatpush.msra.mxu3 %v365_v33  ;;  %v350_v51 = vld [vmem:[%s1922_s3 + $0xa0] sm:$0xff]  ;;  %v344_v52 = vld [vmem:[%s1922_s3 + $0x70] sm:$0xff]  ;;  %v345_v53 = vld [vmem:[%s1922_s3 + $0x78] sm:$0xff] }
  0x3d   : >> { %421 = vmatpush.msra.mxu1 %v363_v38  ;;  %401 = vmatpush.msra.mxu0 %v362_v39  ;;  %v347_v54 = vld [vmem:[%s1922_s3 + $0x88] sm:$0xff]  ;;  %v346_v55 = vld [vmem:[%s1922_s3 + $0x80] sm:$0xff]  ;;  %v340_v56 = vld [vmem:[%s1922_s3 + $0x50] sm:$0xff] }
  0x3e   : >> { %442 = vmatpush.msra.mxu2 %v360_v36  ;;  %462 = vmatpush.msra.mxu3 %v361_v37  ;;  %v341_v57 = vld [vmem:[%s1922_s3 + $0x58] sm:$0xff]  ;;  %v343_v58 = vld [vmem:[%s1922_s3 + $0x68] sm:$0xff]  ;;  %v342_v59 = vld [vmem:[%s1922_s3 + $0x60] sm:$0xff] }
  0x3f   : >> { %422 = vmatpush.msra.mxu1 %v359_v42  ;;  %402 = vmatpush.msra.mxu0 %v358_v43  ;;  %v336_v60 = vld [vmem:[%s1922_s3 + $0x30] sm:$0xff]  ;;  %v337_v61 = vld [vmem:[%s1922_s3 + $0x38] sm:$0xff]  ;;  %v339_v62 = vld [vmem:[%s1922_s3 + $0x48] sm:$0xff] }
  0x40   : >> { %443 = vmatpush.msra.mxu2 %v356_v40  ;;  %463 = vmatpush.msra.mxu3 %v357_v41  ;;  %v338_v63 = vld [vmem:[%s1922_s3 + $0x40] sm:$0xff]  ;;  %v332_v0 = vld [vmem:[%s1922_s3 + $0x10] sm:$0xff]  ;;  %v333_v6 = vld [vmem:[%s1922_s3 + $0x18] sm:$0xff] }
  0x41   : >> { %423 = vmatpush.msra.mxu1 %v355_v46  ;;  %403 = vmatpush.msra.mxu0 %v354_v47  ;;  %v329_v7 = vld [vmem:[#allocation2] sm:$0x3]  ;;  %v335_v8 = vld [vmem:[%s1922_s3 + $0x28] sm:$0xff]  ;;  %v689_v10 = vld [vmem:[%s1924_s5 + $0x1f0] sm:$0xff] }
  0x42   : >> { %444 = vmatpush.msra.mxu2 %v352_v44  ;;  %464 = vmatpush.msra.mxu3 %v353_v45  ;;  %v334_v9 = vld [vmem:[%s1922_s3 + $0x20] sm:$0xff]  ;;  %v690_v11 = vld [vmem:[%s1924_s5 + $0x1f8] sm:$0xff]  ;;  %v331_v12 = vld [vmem:[%s1922_s3 + $0x8] sm:$0xff] }
  0x43   : >> { %424 = vmatpush.msra.mxu1 %v351_v50  ;;  %404 = vmatpush.msra.mxu0 %v350_v51  ;;  %v330_v13 = vld [vmem:[%s1922_s3] sm:$0xff]  ;;  %v688_v15 = vld [vmem:[%s1924_s5 + $0x1e8] sm:$0xff]  ;;  %v685_v16 = vld [vmem:[%s1924_s5 + $0x1d0] sm:$0xff] }
  0x44   : >> { %445 = vmatpush.msra.mxu2 %v348_v48  ;;  %465 = vmatpush.msra.mxu3 %v349_v49  ;;  %v687_v14 = vld [vmem:[%s1924_s5 + $0x1e0] sm:$0xff]  ;;  %v686_v17 = vld [vmem:[%s1924_s5 + $0x1d8] sm:$0xff]  ;;  %v684_v19 = vld [vmem:[%s1924_s5 + $0x1c8] sm:$0xff] }
  0x45   : >> { %425 = vmatpush.msra.mxu1 %v347_v54  ;;  %405 = vmatpush.msra.mxu0 %v346_v55  ;;  %v683_v18 = vld [vmem:[%s1924_s5 + $0x1c0] sm:$0xff]  ;;  %v681_v20 = vld [vmem:[%s1924_s5 + $0x1b0] sm:$0xff]  ;;  %v682_v21 = vld [vmem:[%s1924_s5 + $0x1b8] sm:$0xff] }
  0x46   : >> { %446 = vmatpush.msra.mxu2 %v344_v52  ;;  %466 = vmatpush.msra.mxu3 %v345_v53  ;;  %v679_v22 = vld [vmem:[%s1924_s5 + $0x1a0] sm:$0xff]  ;;  %v680_v23 = vld [vmem:[%s1924_s5 + $0x1a8] sm:$0xff]  ;;  %v677_v24 = vld [vmem:[%s1924_s5 + $0x190] sm:$0xff] }
  0x47   : >> { %426 = vmatpush.msra.mxu1 %v343_v58  ;;  %406 = vmatpush.msra.mxu0 %v342_v59  ;;  %v678_v25 = vld [vmem:[%s1924_s5 + $0x198] sm:$0xff]  ;;  %v675_v26 = vld [vmem:[%s1924_s5 + $0x180] sm:$0xff]  ;;  %v676_v27 = vld [vmem:[%s1924_s5 + $0x188] sm:$0xff] }
  0x48   : >> { %447 = vmatpush.msra.mxu2 %v340_v56  ;;  %467 = vmatpush.msra.mxu3 %v341_v57  ;;  %v673_v28 = vld [vmem:[%s1924_s5 + $0x170] sm:$0xff]  ;;  %v674_v29 = vld [vmem:[%s1924_s5 + $0x178] sm:$0xff]  ;;  %v671_v30 = vld [vmem:[%s1924_s5 + $0x160] sm:$0xff] }
  0x49   : >> { %427 = vmatpush.msra.mxu1 %v339_v62  ;;  %407 = vmatpush.msra.mxu0 %v338_v63  ;;  %v672_v31 = vld [vmem:[%s1924_s5 + $0x168] sm:$0xff]  ;;  %v669_v32 = vld [vmem:[%s1924_s5 + $0x150] sm:$0xff]  ;;  %v670_v33 = vld [vmem:[%s1924_s5 + $0x158] sm:$0xff] }
  0x4a   : >> { %448 = vmatpush.msra.mxu2 %v336_v60  ;;  %468 = vmatpush.msra.mxu3 %v337_v61  ;;  %v667_v34 = vld [vmem:[%s1924_s5 + $0x140] sm:$0xff]  ;;  %v668_v35 = vld [vmem:[%s1924_s5 + $0x148] sm:$0xff]  ;;  %v665_v38 = vld [vmem:[%s1924_s5 + $0x130] sm:$0xff] }
  0x4b   : >> { %428 = vmatpush.msra.mxu1 %v335_v8  ;;  %408 = vmatpush.msra.mxu0 %v334_v9  ;;  %v663_v36 = vld [vmem:[%s1924_s5 + $0x120] sm:$0xff]  ;;  %v664_v37 = vld [vmem:[%s1924_s5 + $0x128] sm:$0xff]  ;;  %v666_v39 = vld [vmem:[%s1924_s5 + $0x138] sm:$0xff] }
  0x4c   : >> { %449 = vmatpush.msra.mxu2 %v332_v0  ;;  %469 = vmatpush.msra.mxu3 %v333_v6  ;;  %v659_v40 = vld [vmem:[%s1924_s5 + $0x100] sm:$0xff]  ;;  %v660_v41 = vld [vmem:[%s1924_s5 + $0x108] sm:$0xff]  ;;  %v661_v42 = vld [vmem:[%s1924_s5 + $0x110] sm:$0xff] }
  0x4d   : >> { %450 = vmatmul.f32.vlgmr.msra.gmra.mxu2 %v329_v7  ;;  %470 = vmatmul.f32.vlgmr.msra.gmra.mxu3 %v329_v7  ;;  %v662_v43 = vld [vmem:[%s1924_s5 + $0x118] sm:$0xff]  ;;  %v655_v44 = vld [vmem:[%s1924_s5 + $0xe0] sm:$0xff]  ;;  %v656_v45 = vld [vmem:[%s1924_s5 + $0xe8] sm:$0xff] }
  0x4e   : >> { %731 = vmatpush.msrb.mxu2 %v689_v10  ;;  %751 = vmatpush.msrb.mxu3 %v690_v11  ;;  %v657_v46 = vld [vmem:[%s1924_s5 + $0xf0] sm:$0xff]  ;;  %v658_v47 = vld [vmem:[%s1924_s5 + $0xf8] sm:$0xff]  ;;  %v651_v48 = vld [vmem:[%s1924_s5 + $0xc0] sm:$0xff] }
  0x4f   : >> { %429 = vmatpush.msra.mxu1 %v331_v12  ;;  %409 = vmatpush.msra.mxu0 %v330_v13  ;;  %v652_v49 = vld [vmem:[%s1924_s5 + $0xc8] sm:$0xff]  ;;  %v653_v50 = vld [vmem:[%s1924_s5 + $0xd0] sm:$0xff]  ;;  %v654_v51 = vld [vmem:[%s1924_s5 + $0xd8] sm:$0xff] }
  0x50   : >> { %430 = vmatmul.f32.vlgmr.msra.gmra.mxu1 %v329_v7  ;;  %410 = vmatmul.f32.vlgmr.msra.gmra.mxu0 %v329_v7  ;;  %v647_v52 = vld [vmem:[%s1924_s5 + $0xa0] sm:$0xff]  ;;  %v648_v53 = vld [vmem:[%s1924_s5 + $0xa8] sm:$0xff]  ;;  %v649_v54 = vld [vmem:[%s1924_s5 + $0xb0] sm:$0xff] }
  0x51   : >> { %691 = vmatpush.msrb.mxu0 %v687_v14  ;;  %711 = vmatpush.msrb.mxu1 %v688_v15  ;;  %v650_v55 = vld [vmem:[%s1924_s5 + $0xb8] sm:$0xff]  ;;  %v643_v56 = vld [vmem:[%s1924_s5 + $0x80] sm:$0xff]  ;;  %v644_v57 = vld [vmem:[%s1924_s5 + $0x88] sm:$0xff] }
  0x52   : >> { %732 = vmatpush.msrb.mxu2 %v685_v16  ;;  %752 = vmatpush.msrb.mxu3 %v686_v17  ;;  %v645_v58 = vld [vmem:[%s1924_s5 + $0x90] sm:$0xff]  ;;  %v646_v59 = vld [vmem:[%s1924_s5 + $0x98] sm:$0xff]  ;;  %v639_v60 = vld [vmem:[%s1924_s5 + $0x60] sm:$0xff] }
  0x53   : >> { %692 = vmatpush.msrb.mxu0 %v683_v18  ;;  %712 = vmatpush.msrb.mxu1 %v684_v19  ;;  %v640_v61 = vld [vmem:[%s1924_s5 + $0x68] sm:$0xff]  ;;  %v641_v62 = vld [vmem:[%s1924_s5 + $0x70] sm:$0xff]  ;;  %v642_v63 = vld [vmem:[%s1924_s5 + $0x78] sm:$0xff] }
  0x54   : >> { %733 = vmatpush.msrb.mxu2 %v681_v20  ;;  %753 = vmatpush.msrb.mxu3 %v682_v21  ;;  %v635_v0 = vld [vmem:[%s1924_s5 + $0x40] sm:$0xff]  ;;  %v636_v6 = vld [vmem:[%s1924_s5 + $0x48] sm:$0xff]  ;;  %v637_v7 = vld [vmem:[%s1924_s5 + $0x50] sm:$0xff] }
  0x55   : >> { %693 = vmatpush.msrb.mxu0 %v679_v22  ;;  %713 = vmatpush.msrb.mxu1 %v680_v23  ;;  %v638_v8 = vld [vmem:[%s1924_s5 + $0x58] sm:$0xff]  ;;  %v631_v9 = vld [vmem:[%s1924_s5 + $0x20] sm:$0xff]  ;;  %v632_v10 = vld [vmem:[%s1924_s5 + $0x28] sm:$0xff] }
  0x56   : >> { %734 = vmatpush.msrb.mxu2 %v677_v24  ;;  %754 = vmatpush.msrb.mxu3 %v678_v25  ;;  %v633_v11 = vld [vmem:[%s1924_s5 + $0x30] sm:$0xff]  ;;  %v634_v12 = vld [vmem:[%s1924_s5 + $0x38] sm:$0xff]  ;;  %v627_v13 = vld [vmem:[%s1924_s5] sm:$0xff] }
  0x57   : >> { %694 = vmatpush.msrb.mxu0 %v675_v26  ;;  %714 = vmatpush.msrb.mxu1 %v676_v27  ;;  %v628_v14 = vld [vmem:[%s1924_s5 + $0x8] sm:$0xff]  ;;  %v629_v15 = vld [vmem:[%s1924_s5 + $0x10] sm:$0xff]  ;;  %v630_v16 = vld [vmem:[%s1924_s5 + $0x18] sm:$0xff] }
  0x58   : >> { %735 = vmatpush.msrb.mxu2 %v673_v28  ;;  %755 = vmatpush.msrb.mxu3 %v674_v29  ;;  %v622_v17 = vld [vmem:[%s1923_s4 + $0x1e0] sm:$0xff]  ;;  %v623_v18 = vld [vmem:[%s1923_s4 + $0x1e8] sm:$0xff]  ;;  %v624_v19 = vld [vmem:[%s1923_s4 + $0x1f0] sm:$0xff] }
  0x59   : >> { %695 = vmatpush.msrb.mxu0 %v671_v30  ;;  %715 = vmatpush.msrb.mxu1 %v672_v31  ;;  %v625_v20 = vld [vmem:[%s1923_s4 + $0x1f8] sm:$0xff]  ;;  %v618_v21 = vld [vmem:[%s1923_s4 + $0x1c0] sm:$0xff]  ;;  %v619_v22 = vld [vmem:[%s1923_s4 + $0x1c8] sm:$0xff] }
  0x5a   : >> { %736 = vmatpush.msrb.mxu2 %v669_v32  ;;  %756 = vmatpush.msrb.mxu3 %v670_v33  ;;  %v620_v23 = vld [vmem:[%s1923_s4 + $0x1d0] sm:$0xff]  ;;  %v621_v24 = vld [vmem:[%s1923_s4 + $0x1d8] sm:$0xff]  ;;  %v614_v25 = vld [vmem:[%s1923_s4 + $0x1a0] sm:$0xff] }
  0x5b   : >> { %696 = vmatpush.msrb.mxu0 %v667_v34  ;;  %716 = vmatpush.msrb.mxu1 %v668_v35  ;;  %v615_v26 = vld [vmem:[%s1923_s4 + $0x1a8] sm:$0xff]  ;;  %v616_v27 = vld [vmem:[%s1923_s4 + $0x1b0] sm:$0xff]  ;;  %v617_v28 = vld [vmem:[%s1923_s4 + $0x1b8] sm:$0xff] }
  0x5c   : >> { %737 = vmatpush.msrb.mxu2 %v665_v38  ;;  %757 = vmatpush.msrb.mxu3 %v666_v39  ;;  %v610_v29 = vld [vmem:[%s1923_s4 + $0x180] sm:$0xff]  ;;  %v611_v30 = vld [vmem:[%s1923_s4 + $0x188] sm:$0xff]  ;;  %v612_v31 = vld [vmem:[%s1923_s4 + $0x190] sm:$0xff] }
  0x5d   : >> { %697 = vmatpush.msrb.mxu0 %v663_v36  ;;  %717 = vmatpush.msrb.mxu1 %v664_v37  ;;  %v613_v32 = vld [vmem:[%s1923_s4 + $0x198] sm:$0xff]  ;;  %v606_v33 = vld [vmem:[%s1923_s4 + $0x160] sm:$0xff]  ;;  %v607_v34 = vld [vmem:[%s1923_s4 + $0x168] sm:$0xff] }
  0x5e   : >> { %738 = vmatpush.msrb.mxu2 %v661_v42  ;;  %758 = vmatpush.msrb.mxu3 %v662_v43  ;;  %v608_v35 = vld [vmem:[%s1923_s4 + $0x170] sm:$0xff]  ;;  %v609_v36 = vld [vmem:[%s1923_s4 + $0x178] sm:$0xff]  ;;  %v602_v39 = vld [vmem:[%s1923_s4 + $0x140] sm:$0xff] }
  0x5f   : >> { %698 = vmatpush.msrb.mxu0 %v659_v40  ;;  %718 = vmatpush.msrb.mxu1 %v660_v41  ;;  %v603_v40 = vld [vmem:[%s1923_s4 + $0x148] sm:$0xff]  ;;  %v604_v41 = vld [vmem:[%s1923_s4 + $0x150] sm:$0xff]  ;;  %v605_v43 = vld [vmem:[%s1923_s4 + $0x158] sm:$0xff] }
  0x60   : >> { %739 = vmatpush.msrb.mxu2 %v657_v46  ;;  %759 = vmatpush.msrb.mxu3 %v658_v47  ;;  %v598_v46 = vld [vmem:[%s1923_s4 + $0x120] sm:$0xff]  ;;  %v599_v47 = vld [vmem:[%s1923_s4 + $0x128] sm:$0xff] }
  0x61   : >> { %699 = vmatpush.msrb.mxu0 %v655_v44  ;;  %719 = vmatpush.msrb.mxu1 %v656_v45 }
  0x62   : >> { %740 = vmatpush.msrb.mxu2 %v653_v50  ;;  %760 = vmatpush.msrb.mxu3 %v654_v51  ;;  %v328_v51 = vld [vmem:[%s327_s8] sm:$0xff] }
  0x63   : >> { %700 = vmatpush.msrb.mxu0 %v651_v48  ;;  %720 = vmatpush.msrb.mxu1 %v652_v49  ;;  %v600_v48 = vld [vmem:[%s1923_s4 + $0x130] sm:$0xff] }
  0x64   : >> { %741 = vmatpush.msrb.mxu2 %v649_v54  ;;  %761 = vmatpush.msrb.mxu3 %v650_v55  ;;  %v594_v54 = vld [vmem:[%s1923_s4 + $0x100] sm:$0xff]  ;;  %v595_v55 = vld [vmem:[%s1923_s4 + $0x108] sm:$0xff] }
  0x65   : >> { %701 = vmatpush.msrb.mxu0 %v647_v52  ;;  %721 = vmatpush.msrb.mxu1 %v648_v53  ;;  %v601_v53 = vld [vmem:[%s1923_s4 + $0x138] sm:$0xff] }
  0x66   : >> { %742 = vmatpush.msrb.mxu2 %v645_v58  ;;  %762 = vmatpush.msrb.mxu3 %v646_v59  ;;  %v597_v58 = vld [vmem:[%s1923_s4 + $0x118] sm:$0xff]  ;;  %v590_v59 = vld [vmem:[%s1923_s4 + $0xe0] sm:$0xff] }
  0x67   : >> { %702 = vmatpush.msrb.mxu0 %v643_v56  ;;  %722 = vmatpush.msrb.mxu1 %v644_v57  ;;  %v596_v56 = vld [vmem:[%s1923_s4 + $0x110] sm:$0xff] }
  0x68   : >> { %743 = vmatpush.msrb.mxu2 %v641_v62  ;;  %763 = vmatpush.msrb.mxu3 %v642_v63  ;;  %v592_v62 = vld [vmem:[%s1923_s4 + $0xf0] sm:$0xff]  ;;  %v593_v63 = vld [vmem:[%s1923_s4 + $0xf8] sm:$0xff] }
  0x69   : >> { %703 = vmatpush.msrb.mxu0 %v639_v60  ;;  %723 = vmatpush.msrb.mxu1 %v640_v61  ;;  %v591_v60 = vld [vmem:[%s1923_s4 + $0xe8] sm:$0xff] }
  0x6a   : >> { %744 = vmatpush.msrb.mxu2 %v637_v7  ;;  %764 = vmatpush.msrb.mxu3 %v638_v8  ;;  %v587_v7 = vld [vmem:[%s1923_s4 + $0xc8] sm:$0xff]  ;;  %v588_v8 = vld [vmem:[%s1923_s4 + $0xd0] sm:$0xff] }
  0x6b   : >> { %704 = vmatpush.msrb.mxu0 %v635_v0  ;;  %724 = vmatpush.msrb.mxu1 %v636_v6  ;;  %v586_v6 = vld [vmem:[%s1923_s4 + $0xc0] sm:$0xff] }
  0x6c   : >> { %745 = vmatpush.msrb.mxu2 %v633_v11  ;;  %765 = vmatpush.msrb.mxu3 %v634_v12 }
  0x6d   : >> { %705 = vmatpush.msrb.mxu0 %v631_v9  ;;  %725 = vmatpush.msrb.mxu1 %v632_v10  ;;  %v589_v9 = vld [vmem:[%s1923_s4 + $0xd8] sm:$0xff] }
  0x6e   : >> { %746 = vmatpush.msrb.mxu2 %v629_v15  ;;  %766 = vmatpush.msrb.mxu3 %v630_v16  ;;  %v584_v15 = vld [vmem:[%s1923_s4 + $0xb0] sm:$0xff]  ;;  %v585_v16 = vld [vmem:[%s1923_s4 + $0xb8] sm:$0xff] }
  0x6f   : >> { %706 = vmatpush.msrb.mxu0 %v627_v13  ;;  %726 = vmatpush.msrb.mxu1 %v628_v14  ;;  %v582_v13 = vld [vmem:[%s1923_s4 + $0xa0] sm:$0xff]  ;;  %v583_v14 = vld [vmem:[%s1923_s4 + $0xa8] sm:$0xff] }
  0x70   : >> { %811 = vmatpush.msra.mxu2 %v624_v19  ;;  %831 = vmatpush.msra.mxu3 %v625_v20  ;;  %v578_v19 = vld [vmem:[%s1923_s4 + $0x80] sm:$0xff]  ;;  %v579_v20 = vld [vmem:[%s1923_s4 + $0x88] sm:$0xff] }
  0x71   : >> { %771 = vmatpush.msra.mxu0 %v622_v17  ;;  %791 = vmatpush.msra.mxu1 %v623_v18 }
  0x72   : >> { %812 = vmatpush.msra.mxu2 %v620_v23  ;;  %832 = vmatpush.msra.mxu3 %v621_v24  ;;  %v626_v23 = vld [vmem:[#allocation4] sm:$0x3] }
  0x73   : >> { %772 = vmatpush.msra.mxu0 %v618_v21  ;;  %792 = vmatpush.msra.mxu1 %v619_v22  ;;  %v580_v21 = vld [vmem:[%s1923_s4 + $0x90] sm:$0xff]  ;;  %v581_v22 = vld [vmem:[%s1923_s4 + $0x98] sm:$0xff]  ;;  %v574_v24 = vld [vmem:[%s1923_s4 + $0x60] sm:$0xff] }
  0x74   : >> { %813 = vmatpush.msra.mxu2 %v616_v27  ;;  %833 = vmatpush.msra.mxu3 %v617_v28  ;;  %v577_v27 = vld [vmem:[%s1923_s4 + $0x78] sm:$0xff] }
  0x75   : >> { %773 = vmatpush.msra.mxu0 %v614_v25  ;;  %793 = vmatpush.msra.mxu1 %v615_v26  ;;  %v575_v25 = vld [vmem:[%s1923_s4 + $0x68] sm:$0xff]  ;;  %v576_v26 = vld [vmem:[%s1923_s4 + $0x70] sm:$0xff] }
  0x76   : >> { %814 = vmatpush.msra.mxu2 %v612_v31  ;;  %834 = vmatpush.msra.mxu3 %v613_v32  ;;  %v572_v32 = vld [vmem:[%s1923_s4 + $0x50] sm:$0xff] }
  0x77   : >> { %774 = vmatpush.msra.mxu0 %v610_v29  ;;  %794 = vmatpush.msra.mxu1 %v611_v30  ;;  %v570_v29 = vld [vmem:[%s1923_s4 + $0x40] sm:$0xff]  ;;  %v571_v30 = vld [vmem:[%s1923_s4 + $0x48] sm:$0xff] }
  0x78   : >> { %815 = vmatpush.msra.mxu2 %v608_v35  ;;  %835 = vmatpush.msra.mxu3 %v609_v36  ;;  %v566_v35 = vld [vmem:[%s1923_s4 + $0x20] sm:$0xff]  ;;  %v567_v36 = vld [vmem:[%s1923_s4 + $0x28] sm:$0xff] }
  0x79   : >> { %775 = vmatpush.msra.mxu0 %v606_v33  ;;  %795 = vmatpush.msra.mxu1 %v607_v34  ;;  %v573_v33 = vld [vmem:[%s1923_s4 + $0x58] sm:$0xff] }
  0x7a   : >> { %816 = vmatpush.msra.mxu2 %v604_v41  ;;  %836 = vmatpush.msra.mxu3 %v605_v43  ;;  %v563_v43 = vld [vmem:[%s1923_s4 + $0x8] sm:$0xff] }
  0x7b   : >> { %776 = vmatpush.msra.mxu0 %v602_v39  ;;  %796 = vmatpush.msra.mxu1 %v603_v40  ;;  %v569_v39 = vld [vmem:[%s1923_s4 + $0x38] sm:$0xff] }
  0x7c   : >> { %817 = vmatpush.msra.mxu2 %v600_v48  ;;  %837 = vmatpush.msra.mxu3 %v601_v53 }
  0x7d   : >> { %777 = vmatpush.msra.mxu0 %v598_v46  ;;  %797 = vmatpush.msra.mxu1 %v599_v47  ;;  %v921_v46 = vld [vmem:[%s1921_s2] sm:$0x3]  ;;  %v924_v47 = vstv %s923_s25 }
  0x7e   : >> { %818 = vmatpush.msra.mxu2 %v596_v56  ;;  %838 = vmatpush.msra.mxu3 %v597_v58  ;;  %vm925_vm3 = vcmp.eq.s32.totalorder %v921_v46, %v924_v47 }
  0x7f   : >> { %778 = vmatpush.msra.mxu0 %v594_v54  ;;  %798 = vmatpush.msra.mxu1 %v595_v55 }
  0x80   : >> { %819 = vmatpush.msra.mxu2 %v592_v62  ;;  %839 = vmatpush.msra.mxu3 %v593_v63 }
  0x81   : >> { %779 = vmatpush.msra.mxu0 %v590_v59  ;;  %799 = vmatpush.msra.mxu1 %v591_v60 }
  0x82   : >> { %820 = vmatpush.msra.mxu2 %v588_v8  ;;  %840 = vmatpush.msra.mxu3 %v589_v9 }
  0x83   : >> { %780 = vmatpush.msra.mxu0 %v586_v6  ;;  %800 = vmatpush.msra.mxu1 %v587_v7 }
  0x84   : >> { %821 = vmatpush.msra.mxu2 %v584_v15  ;;  %841 = vmatpush.msra.mxu3 %v585_v16 }
  0x85   : >> { %781 = vmatpush.msra.mxu0 %v582_v13  ;;  %801 = vmatpush.msra.mxu1 %v583_v14  ;;  %v554_v13 = vld [vmem:[#allocation3] sm:$0x3] }
  0x86   : >> { %822 = vmatpush.msra.mxu2 %v580_v21  ;;  %842 = vmatpush.msra.mxu3 %v581_v22 }
  0x87   : >> { %782 = vmatpush.msra.mxu0 %v578_v19  ;;  %802 = vmatpush.msra.mxu1 %v579_v20 }
  0x88   : >> { %707 = vmatmul.f32.vlgmr.msrb.gmra.mxu0 %v626_v23  ;;  %727 = vmatmul.f32.vlgmr.msrb.gmra.mxu1 %v626_v23 }
  0x89   : >> { %747 = vmatmul.f32.vlgmr.msrb.gmra.mxu2 %v626_v23  ;;  %767 = vmatmul.f32.vlgmr.msrb.gmra.mxu3 %v626_v23 }
  0x8a   : >> { %783 = vmatpush.msra.mxu0 %v574_v24  ;;  %803 = vmatpush.msra.mxu1 %v575_v25 }
  0x8b   : >> { %823 = vmatpush.msra.mxu2 %v576_v26  ;;  %843 = vmatpush.msra.mxu3 %v577_v27 }
  0x8c   : >> { %784 = vmatpush.msra.mxu0 %v570_v29  ;;  %804 = vmatpush.msra.mxu1 %v571_v30 }
  0x8d   : >> { %824 = vmatpush.msra.mxu2 %v572_v32  ;;  %844 = vmatpush.msra.mxu3 %v573_v33 }
  0x8e   : >> { %785 = vmatpush.msra.mxu0 %v566_v35  ;;  %805 = vmatpush.msra.mxu1 %v567_v36 }
  0x8f   : >> { %845 = vmatpush.msra.mxu3 %v569_v39 }
  0x90   : >> { %806 = vmatpush.msra.mxu1 %v563_v43 }
  0xcd   : >> { %v431_v37 = vpop.f32.mrf.mxu1  ;;  %v411_v38 = vpop.f32.mrf.mxu0 }
  0xce   : >> { %v478_v42 = vrot.slane %v431_v37, 6 }
  0xd0   : >> { %v451_v44 = vpop.f32.mrf.mxu2  ;;  %v471_v45 = vpop.f32.mrf.mxu3  ;;  %v482_v52 = vsel %vm481_vm0, %v411_v38, %v478_v42  ;;  %v568_v38 = vld [vmem:[%s1923_s4 + $0x30] sm:$0xff]  ;;  %v562_v42 = vld [vmem:[%s1923_s4] sm:$0xff] }
  0xd1   : >> { %v479_v49 = vrot.slane %v451_v44, 4  ;;  %v480_v50 = vrot.slane %v471_v45, 2  ;;  %v564_v44 = vld [vmem:[%s1923_s4 + $0x10] sm:$0xff]  ;;  %v565_v45 = vld [vmem:[%s1923_s4 + $0x18] sm:$0xff]  ;;  %825 = vmatpush.msra.mxu2 %v568_v38  ;;  %786 = vmatpush.msra.mxu0 %v562_v42 }
  0xd2   : >> { %846 = vmatpush.msra.mxu3 %v565_v45 }
  0xd3   : >> { %v484_v57 = vsel %vm483_vm1, %v479_v49, %v480_v50  ;;  %826 = vmatpush.msra.mxu2 %v564_v44  ;;  %v1197_v49 = vmov 0  }
  0xd4   : >> { %v486_v61 = vsel %vm485_vm2, %v482_v52, %v484_v57  ;;  %1099 = vset.pattern.permute.xlu0 %v1197_v49  ;;  %v927_v50 = vsel %vm925_vm3, 1, %v1197_v49 }
  0xd5   : >> { %v1784_v0 = vadd.f32 %v486_v61, %v328_v51  ;;  %929 = vperm.xlu0 %1099, %v927_v50  }
  0xd7   : >> { %v1044_v10 = vmul.f32 -1.442695, %v1784_v0  ;;  %v509_v11 = vrot.slane %v1784_v0, 2  ;;  %v533_v12 = vrot.slane %v1784_v0, 6  ;;  %v530_v54 = vrot.slane %v1784_v0, 4 }
  0xd9   : >> { %1100 = vpow2.f32 %v1044_v10  ;;  %v1045_v17 = vmul.f32 -1.442695, %v509_v11  ;;  %v1046_v18 = vmul.f32 -1.442695, %v533_v12 }
  0xdb   : >> { %1102 = vpow2.f32 %v1045_v17 }
  0xdc   : >> { %1104 = vpow2.f32 %v1046_v18 }
  0xdf   : >> { %v1101_v28 = vpop.eup %1100 }
  0xe0   : >> { %v1845_v31 = vadd.f32 1.0, %v1101_v28 }
  0xe1   : >> { %v1103_v34 = vpop.eup %1102 }
  0xe2   : >> { %v1105_v37 = vpop.eup %1104  ;;  %1106 = vrcp.f32 %v1845_v31  ;;  %v514_v40 = vadd.f32 1.0, %v1103_v34  ;;  %v504_v58 = vand.u32 2147483648, %v1845_v31  ;;  %v502_v60 = vand.u32 2147483647, %v1845_v31 }
  0xe3   : >> { %v1866_v41 = vadd.f32 1.0, %v1105_v37  ;;  %vm498_vm5 = vweird.f32 %v1845_v31 }
  0xe4   : >> { %1108 = vrcp.f32 %v514_v40  ;;  %v526_v63 = vand.u32 2147483648, %v514_v40  ;;  %v524_v0 = vand.u32 2147483647, %v514_v40  ;;  %v505_v8 = vor.u32 1.1754944e-38, %v504_v58 }
  0xe5   : >> { %1110 = vrcp.f32 %v1866_v41  ;;  %vm503_vm8 = vcmp.eq.f32.partialorder %v502_v60, 8.507059e+37  ;;  %vm520_vm9 = vweird.f32 %v514_v40  ;;  %v550_v22 = vand.u32 2147483648, %v1866_v41 }
  0xe6   : >> { %1112 = vtanh.f32 %v530_v54  ;;  %v527_v12 = vor.u32 1.1754944e-38, %v526_v63  ;;  %vm525_vm11 = vcmp.eq.f32.partialorder %v524_v0, 8.507059e+37  ;;  %vm544_vm13 = vweird.f32 %v1866_v41 }
  0xe7   : >> { %v548_v23 = vand.u32 2147483647, %v1866_v41  ;;  %v551_v25 = vor.u32 1.1754944e-38, %v550_v22 }
  0xe8   : >> { %v1107_v48 = vpop.eup %1106 }
  0xe9   : >> { %v494_v51 = vmul.f32 %v1107_v48, %v1845_v31  ;;  %vm499_vm4 = vweird.f32 %v1107_v48  ;;  %vm549_vm15 = vcmp.eq.f32.partialorder %v548_v23, 8.507059e+37 }
  0xea   : >> { %v1109_v52 = vpop.eup %1108  ;;  %vm500_vm6 = vmor %vm498_vm5, %vm499_vm4 }
  0xeb   : >> { %v495_v53 = vsub.f32 1.0, %v494_v51  ;;  %v1111_v55 = vpop.eup %1110  ;;  %v516_v56 = vmul.f32 %v1109_v52, %v514_v40  ;;  %vm521_vm7 = vweird.f32 %v1109_v52 }
  0xec   : >> { %v540_v59 = vmul.f32 %v1111_v55, %v1866_v41  ;;  %vm522_vm10 = vmor %vm520_vm9, %vm521_vm7  ;;  %v1113_v15 = vpop.eup %1112  ;;  %vm545_vm12 = vweird.f32 %v1111_v55 }
  0xed   : >> { %v496_v57 = vmul.f32 %v1107_v48, %v495_v53  ;;  %v517_v61 = vsub.f32 1.0, %v516_v56  ;;  %vm546_vm14 = vmor %vm544_vm13, %vm545_vm12 }
  0xee   : >> { %v541_v9 = vsub.f32 1.0, %v540_v59 }
  0xef   : >> { %v497_v62 = vadd.f32 %v1107_v48, %v496_v57  ;;  %v518_v6 = vmul.f32 %v1109_v52, %v517_v61 }
  0xf0   : >> { %v542_v17 = vmul.f32 %v1111_v55, %v541_v9 }
  0xf1   : >> { %v501_v7 = vsel %vm500_vm6, %v1107_v48, %v497_v62  ;;  %v519_v10 = vadd.f32 %v1109_v52, %v518_v6 }
  0xf2   : >> { %v506_v11 = vsel %vm503_vm8, %v505_v8, %v501_v7  ;;  %v543_v21 = vadd.f32 %v1111_v55, %v542_v17 }
  0xf3   : >> { %v523_v14 = vsel %vm522_vm10, %v1109_v52, %v519_v10  ;;  %v556_v18 = vmul.f32 %v1113_v15, %v506_v11 }
  0xf4   : >> { %v528_v16 = vsel %vm525_vm11, %v527_v12, %v523_v14  ;;  %v547_v24 = vsel %vm546_vm14, %v1111_v55, %v543_v21  ;;  %v913_v14 = vld [vmem:[#allocation5] sm:$0x3] }
  0xf5   : >> { %v555_v19 = vmul.f32 %v554_v13, %v528_v16  ;;  %v552_v27 = vsel %vm549_vm15, %v551_v25, %v547_v24 }
  0xf7   : >> { %v557_v20 = vadd.f32 %v556_v18, %v555_v19 }
  0xf9   : >> { %1114 = vtanh.f32 %v557_v20  ;;  %560 = vst [vmem:[#allocation3] sm:$0x3] %v557_v20 }
  0xff   : >> { %v1115_v26 = vpop.eup %1114 }
 0x100   : >> { %v559_v28 = vmul.f32 %v1115_v26, %v552_v27 }
 0x102   : >> { %561 = vst [vmem:[#allocation2] sm:$0x3] %v559_v28  ;;  %787 = vmatmul.f32.vlgmr.msra.gmra.mxu0 %v559_v28  ;;  %807 = vmatmul.f32.vlgmr.msra.gmra.mxu1 %v559_v28 }
 0x103   : >> { %827 = vmatmul.f32.vlgmr.msra.gmra.mxu2 %v559_v28  ;;  %847 = vmatmul.f32.vlgmr.msra.gmra.mxu3 %v559_v28 }
 0x105   : >> { %v708_v29 = vpop.f32.mrf.mxu0  ;;  %v728_v30 = vpop.f32.mrf.mxu1 }
 0x10c   : >> { %v768_v31 = vpop.f32.mrf.mxu3  ;;  %v748_v38 = vpop.f32.mrf.mxu2 }
 0x147   : >> { %v930_v27 = vpop.permute.xlu0 %929 }
 0x148   : >> { %vm931_vm12 = vcmp.eq.s32.totalorder %v930_v27, 1 }
 0x17f   : >> { %v788_v32 = vpop.f32.mrf.mxu0  ;;  %v808_v33 = vpop.f32.mrf.mxu1 }
 0x180   : >> { %v789_v34 = vadd.f32 %v788_v32, %v708_v29  ;;  %v809_v35 = vadd.f32 %v808_v33, %v728_v30 }
 0x182   : >> { %v851_v36 = vadd.f32 %v789_v34, %v304_v2  ;;  %v852_v37 = vadd.f32 %v809_v35, %v305_v3 }
 0x184   : >> { %v1047_v39 = vmul.f32 -1.442695, %v851_v36  ;;  %v1048_v40 = vmul.f32 -1.442695, %v852_v37 }
 0x186   : >> { %1116 = vpow2.f32 %v1047_v39  ;;  %v848_v41 = vpop.f32.mrf.mxu3  ;;  %v828_v49 = vpop.f32.mrf.mxu2 }
 0x187   : >> { %1118 = vpow2.f32 %v1048_v40  ;;  %v849_v42 = vadd.f32 %v848_v41, %v768_v31  ;;  %v829_v50 = vadd.f32 %v828_v49, %v748_v38  ;;  %v926_v31 = vld [vmem:[#allocation8] sm:$0x3] }
 0x189   : >> { %v854_v43 = vadd.f32 %v849_v42, %v307_v5  ;;  %v853_v54 = vadd.f32 %v829_v50, %v306_v4 }
 0x18b   : >> { %v1049_v44 = vmul.f32 -1.442695, %v854_v43 }
 0x18c   : >> { %v1117_v45 = vpop.eup %1116 }
 0x18d   : >> { %v1119_v46 = vpop.eup %1118  ;;  %v858_v47 = vadd.f32 1.0, %v1117_v45  ;;  %1120 = vpow2.f32 %v1049_v44 }
 0x18e   : >> { %v877_v48 = vadd.f32 1.0, %v1119_v46 }
 0x18f   : >> { %1122 = vrcp.f32 %v858_v47  ;;  %v870_v60 = vand.u32 2147483648, %v858_v47  ;;  %v868_v63 = vand.u32 2147483647, %v858_v47  ;;  %vm864_vm2 = vweird.f32 %v858_v47 }
 0x190   : >> { %1124 = vrcp.f32 %v877_v48  ;;  %v889_v61 = vand.u32 2147483648, %v877_v48  ;;  %v887_v0 = vand.u32 2147483647, %v877_v48  ;;  %vm883_vm3 = vweird.f32 %v877_v48 }
 0x191   : >> { %v871_v9 = vor.u32 1.1754944e-38, %v870_v60  ;;  %vm869_vm6 = vcmp.eq.f32.partialorder %v868_v63, 8.507059e+37 }
 0x192   : >> { %v890_v12 = vor.u32 1.1754944e-38, %v889_v61  ;;  %vm888_vm7 = vcmp.eq.f32.partialorder %v887_v0, 8.507059e+37 }
 0x193   : >> { %v1121_v51 = vpop.eup %1120 }
 0x194   : >> { %v897_v52 = vadd.f32 1.0, %v1121_v51 }
 0x195   : >> { %v1123_v53 = vpop.eup %1122 }
 0x196   : >> { %v1125_v55 = vpop.eup %1124  ;;  %v860_v56 = vmul.f32 %v1123_v53, %v858_v47  ;;  %1126 = vrcp.f32 %v897_v52  ;;  %vm865_vm0 = vweird.f32 %v1123_v53  ;;  %v909_v25 = vand.u32 2147483648, %v897_v52 }
 0x197   : >> { %v879_v57 = vmul.f32 %v1125_v55, %v877_v48  ;;  %1128 = vtanh.f32 %v853_v54  ;;  %vm884_vm1 = vweird.f32 %v1125_v55  ;;  %vm866_vm4 = vmor %vm864_vm2, %vm865_vm0  ;;  %vm903_vm9 = vweird.f32 %v897_v52 }
 0x198   : >> { %v861_v58 = vsub.f32 1.0, %v860_v56  ;;  %vm885_vm5 = vmor %vm883_vm3, %vm884_vm1  ;;  %v907_v26 = vand.u32 2147483647, %v897_v52  ;;  %v910_v29 = vor.u32 1.1754944e-38, %v909_v25 }
 0x199   : >> { %v880_v59 = vsub.f32 1.0, %v879_v57 }
 0x19a   : >> { %v862_v62 = vmul.f32 %v1123_v53, %v861_v58  ;;  %vm908_vm11 = vcmp.eq.f32.partialorder %v907_v26, 8.507059e+37 }
 0x19b   : >> { %v881_v6 = vmul.f32 %v1125_v55, %v880_v59 }
 0x19c   : >> { %v1127_v7 = vpop.eup %1126  ;;  %v863_v8 = vadd.f32 %v1123_v53, %v862_v62 }
 0x19d   : >> { %v882_v10 = vadd.f32 %v1125_v55, %v881_v6  ;;  %v899_v11 = vmul.f32 %v1127_v7, %v897_v52  ;;  %v1129_v15 = vpop.eup %1128  ;;  %vm904_vm8 = vweird.f32 %v1127_v7 }
 0x19e   : >> { %v867_v13 = vsel %vm866_vm4, %v1123_v53, %v863_v8  ;;  %vm905_vm10 = vmor %vm903_vm9, %vm904_vm8 }
 0x19f   : >> { %v872_v16 = vsel %vm869_vm6, %v871_v9, %v867_v13  ;;  %v886_v17 = vsel %vm885_vm5, %v1125_v55, %v882_v10  ;;  %v900_v18 = vsub.f32 1.0, %v899_v11 }
 0x1a0   : >> { %v891_v19 = vsel %vm888_vm7, %v890_v12, %v886_v17  ;;  %v915_v20 = vmul.f32 %v1129_v15, %v872_v16 }
 0x1a1   : >> { %v914_v21 = vmul.f32 %v913_v14, %v891_v19  ;;  %v901_v22 = vmul.f32 %v1127_v7, %v900_v18 }
 0x1a3   : >> { %v916_v23 = vadd.f32 %v915_v20, %v914_v21  ;;  %v902_v24 = vadd.f32 %v1127_v7, %v901_v22 }
 0x1a5   : >> { %1130 = vtanh.f32 %v916_v23  ;;  %919 = vst [vmem:[#allocation5] sm:$0x3] %v916_v23  ;;  %v906_v28 = vsel %vm905_vm10, %v1127_v7, %v902_v24 }
 0x1a6   : >> { %v911_v32 = vsel %vm908_vm11, %v910_v29, %v906_v28 }
 0x1ab   : >> { %v1131_v30 = vpop.eup %1130  ;;  %324 = sbr.rel (!%p321_p9) target bundleno = 45 (0x2d), region = 87 }
 0x1ac   : >> { %v918_v33 = vmul.f32 %v1131_v30, %v911_v32 }
 0x1ae   : >> { %920 = vst [vmem:[#allocation4] sm:$0x3] %v918_v33  ;;  %v932_v34 = vsel %vm931_vm12, %v918_v33, %v926_v31 }
 0x1af   : >> { %933 = vst [vmem:[#allocation8] sm:$0x3] %v932_v34 }
 0x1b0 PF: > { %p1062_p10 = scmp.eq.s32.totalorder %s1026_s0, 1  ;;  %s944_s26 = sshll.u32 %s1926_s7, 4  ;;  %s945_s26 = int_to_ptr.hbm [resolvable:$true] %s944_s26 }
 0x1b1   : > { %s1198_s9 = smov [#allocation8]  }
 0x1b2   : > { %s942_s11 = sshll.u32 %s1198_s9, 4  ;;  %s943_s11 = int_to_ptr.vmem [resolvable:$true] %s942_s11 }
 0x1b3   : > { %1059 = dma.vmem_to_hbm [thread:$0]  (%p1062_p10), %s943_s11, 32, %s945_s26, [#allocation9]  }
 0x1b4   : > { %1177 = dma.done.wait (%p1062_p10), [#allocation9], 32  }
 0x1b5   : > { %1179 = vsyncadd (%p1062_p10), [#allocation9], 4294967264 }
 0x1b6 PF: > { %s19_s28 = sadd.s32 1, %s1190_s28   ;;  %s1927_s26 = smov %s1186_s27 }
 0x1b7   : > { %p16_p11 = scmp.ge.s32.totalorder %s19_s28, 4   ;;  %s1928_s27 = smov %s1930_s29 }
 0x1b9   :  { %18 = sbr.rel (!%p16_p11) target bundleno = 4 (0x4), region = 98 }
 0x1be   :  { %958 = vsyncpa [#allocation9], 1 }
 0x1bf   :  { %960 = vsyncpa [#allocation9 + $0x1], 1 }

</bundles_post_ra>
